<compile_context>
chip_gen: v7x
topology: tpu7x:2x2x1
jax: 0.10.0
libtpu: 0.0.40
codegen_flags: <defaults>
</compile_context>

<pallas_src>
import jax
import jax.numpy as jnp
import numpy as np
from jax.experimental import pallas as pl

# ---- small-but-consistent hyper-parameters ----------------------------------
B, L, E = 4, 16, 32        # batch, seq_len, emb_dim
H = 32                     # mlp_dims[-1]
KS = (1, 2, 3, 5, 10)      # feature_kernel kernel sizes
C_PER_K = 64               # channels per kernel size
FEAT = C_PER_K * len(KS)   # 320
NUM_EXPERT = 5
DOMAIN_NUM = 8
GATE_NUM = 10
N_GROUPS = DOMAIN_NUM + 1          # 8 domain groups + 1 shared group
N_EXPERTS = N_GROUPS * NUM_EXPERT  # 45
WIDE = N_EXPERTS * C_PER_K         # 2880 lane-dense conv output width
VOCAB = 100
NEG_BIG = -1e30                    # python float -> jaxpr literal (NOT a captured array)


# =============================== Pallas kernels ===============================
def cnn_experts_kernel(x1, x2, x3, x5, x10, w1, w2, w3, w5, w10,
                       b1, b2, b3, b5, b10, out_ref):
    """All 45 experts at once: one wide matmul per kernel size + max over L."""
    x_refs = (x1, x2, x3, x5, x10)        # bf16 im2col: (B*lout_k, k*E)
    w_refs = (w1, w2, w3, w5, w10)        # bf16 wide weights: (k*E, 2880)
    b_refs = (b1, b2, b3, b5, b10)        # f32 wide bias: (1, 2880)
    for gi, k in enumerate(KS):
        lout = L - k + 1
        acc = jnp.dot(x_refs[gi][...], w_refs[gi][...],
                      preferred_element_type=jnp.float32)        # (B*lout, 2880)
        rows = []
        for bi in range(B):               # static slices; 4 XLU column-reduces
            rows.append(jnp.max(acc[bi * lout:(bi + 1) * lout, :],
                                axis=0, keepdims=True))          # (1, 2880)
        # bias is constant over L -> add after the max (equivalent, cheaper)
        out_ref[gi] = jnp.concatenate(rows, axis=0) + b_refs[gi][...]   # (B, 2880)


def mask_attention_kernel(x_ref, mask_ref, w_ref, b_ref, out_ref):
    """MaskAttention, batched over B: masked softmax pooling over L."""
    x = x_ref[...]                                              # (B, L, E)
    w = w_ref[...]                                              # (1, E)
    scores = jnp.sum(x * w[None, :, :], axis=-1) + b_ref[...]   # (B, L)
    scores = jnp.where(mask_ref[...] > 0, scores, NEG_BIG)
    m = jnp.max(scores, axis=-1, keepdims=True)
    ex = jnp.exp(scores - m)
    denom = jnp.sum(ex, axis=-1, keepdims=True)
    alpha = ex * pl.reciprocal(denom, approx=True)              # (B, L)
    out_ref[...] = jnp.sum(alpha[:, :, None] * x, axis=1)       # (B, E)


def moe_classifier_kernel(own_ref, share_ref, gate_ref,
                          w1_ref, b1_ref, w2t_ref, b2_ref, out_ref):
    """All 8 domains at once: gated expert mixture + MLP + sigmoid -> (8, B)."""
    g = gate_ref[...]                                           # (8, B, 10)
    mix = jnp.zeros((DOMAIN_NUM, B, FEAT), jnp.float32)
    for i in range(NUM_EXPERT):
        mix = mix + own_ref[i] * g[:, :, i:i + 1]                     # (8,B,320)
        mix = mix + share_ref[i][None] * g[:, :, NUM_EXPERT + i:NUM_EXPERT + i + 1]
    h = jnp.einsum("dbf,dfh->dbh", mix, w1_ref[...],
                   preferred_element_type=jnp.float32) + b1_ref[...]  # (8,B,H)
    h = jnp.maximum(h, 0.0)                                     # ReLU (Dropout==id)
    logit = jnp.sum(h * w2t_ref[...], axis=-1) + b2_ref[...]    # (8, B)
    out_ref[...] = jax.nn.sigmoid(logit)


# ============================== pallas_call wrappers ==========================
def widen_conv_params(params):
    """(45,k,E,64) -> (k*E, 45*64) bf16 weights and (1, 45*64) f32 biases."""
    ws, bs = [], []
    for gi, k in enumerate(KS):
        w = params["conv_w"][gi]                                  # (45, k, E, 64)
        ws.append(w.transpose(1, 2, 0, 3).reshape(k * E, WIDE).astype(jnp.bfloat16))
        bs.append(params["conv_b"][gi].reshape(1, WIDE))
    return ws, bs


def run_cnn_experts(x, conv_w_wide, conv_b_wide):
    # im2col in the wrapper (layout plumbing): (B, lout, k*E) -> (B*lout, k*E)
    xks = []
    for k in KS:
        lout = L - k + 1
        xk = jnp.concatenate([x[:, j:j + lout, :] for j in range(k)], axis=-1)
        xks.append(xk.reshape(B * lout, k * E).astype(jnp.bfloat16))
    wide = pl.pallas_call(
        cnn_experts_kernel,
        out_shape=jax.ShapeDtypeStruct((len(KS), B, WIDE), jnp.float32),
    )(*xks, *conv_w_wide, *conv_b_wide)
    # (5, B, 45*64) -> (45, B, 5*64): per-expert concat over kernel sizes.
    return (wide.reshape(len(KS), B, N_EXPERTS, C_PER_K)
                .transpose(2, 1, 0, 3).reshape(N_EXPERTS, B, FEAT))


def run_mask_attention(x, mask, w_att, b_att):
    return pl.pallas_call(
        mask_attention_kernel,
        out_shape=jax.ShapeDtypeStruct((B, E), jnp.float32),
    )(x, mask, w_att.reshape(1, E), b_att)


def run_moe_classifier(feats, gates, cW1, cb1, cW2, cb2):
    own = feats[:DOMAIN_NUM * NUM_EXPERT].reshape(DOMAIN_NUM, NUM_EXPERT, B, FEAT)
    own_t = own.transpose(1, 0, 2, 3)                            # (5, 8, B, 320)
    share = feats[DOMAIN_NUM * NUM_EXPERT:]                      # (5, B, 320)
    return pl.pallas_call(
        moe_classifier_kernel,
        out_shape=jax.ShapeDtypeStruct((DOMAIN_NUM, B), jnp.float32),
    )(own_t, share, gates, cW1, cb1,
      cW2.transpose(0, 2, 1), cb2.reshape(DOMAIN_NUM, 1))


# ================================ model forward ===============================
def forward(params, content, content_masks, category):
    # TODO(synk): frozen pretrained BertModel replaced by a deterministic
    # token-embedding lookup producing init_feature with the same [B, L, E] layout.
    x = params["token_emb"][content]                             # (B, L, E)

    att = run_mask_attention(x, content_masks, params["w_att"], params["b_att"])
    dom = params["domain_emb"][category]                         # (B, E)
    gate_in = jnp.concatenate([dom, att], axis=-1)               # (B, 2E)

    # 8 gate MLPs (Linear -> exact GELU -> Linear -> Softmax), plain JAX glue.
    gh = jax.nn.gelu(jnp.einsum("be,deh->dbh", gate_in, params["gW1"])
                     + params["gb1"][:, None, :], approximate=False)
    glogits = jnp.einsum("dbh,dhg->dbg", gh, params["gW2"]) + params["gb2"][:, None, :]
    gates = jax.nn.softmax(glogits, axis=-1)                     # (8, B, 10)

    conv_w_wide, conv_b_wide = widen_conv_params(params)
    feats = run_cnn_experts(x, conv_w_wide, conv_b_wide)         # (45, B, 320)

    preds = run_moe_classifier(feats, gates, params["cW1"], params["cb1"],
                               params["cW2"], params["cb2"])     # (8, B)

    label_pred = jnp.mean(preds, axis=0)                         # (B,)
    # label_pred_list == cat_d( pred_d[category == d] ); realized with a stable
    # argsort by category (same values, same order, static shape).
    own_pred = preds[category, jnp.arange(B)]
    label_pred_list = own_pred[jnp.argsort(category)]
    return label_pred_list, label_pred


# ============================ pure-JAX reference ==============================
def ref_forward(params, content, content_masks, category):
    x = params["token_emb"][content]
    scores = jnp.einsum("ble,eo->bl", x, params["w_att"]) + params["b_att"][0, 0]
    scores = jnp.where(content_masks > 0, scores, NEG_BIG)
    alpha = jax.nn.softmax(scores, axis=-1)
    att = jnp.einsum("bl,ble->be", alpha, x)
    dom = params["domain_emb"][category]
    gate_in = jnp.concatenate([dom, att], axis=-1)
    gh = jax.nn.gelu(jnp.einsum("be,deh->dbh", gate_in, params["gW1"])
                     + params["gb1"][:, None, :], approximate=False)
    glogits = jnp.einsum("dbh,dhg->dbg", gh, params["gW2"]) + params["gb2"][:, None, :]
    gates = jax.nn.softmax(glogits, axis=-1)

    def expert(eidx):
        fs = []
        for gi, k in enumerate(KS):
            w = params["conv_w"][gi][eidx]
            bb = params["conv_b"][gi][eidx, 0]
            lout = L - k + 1
            acc = jnp.zeros((B, lout, C_PER_K), jnp.float32)
            for j in range(k):
                acc = acc + jnp.einsum("ble,ec->blc", x[:, j:j + lout], w[j])
            acc = acc + bb
            fs.append(jnp.max(acc, axis=1))
        return jnp.concatenate(fs, axis=-1)

    all_feats = jnp.stack([expert(e) for e in range(N_EXPERTS)])
    own = all_feats[:40].reshape(DOMAIN_NUM, NUM_EXPERT, B, FEAT)
    share = all_feats[40:]
    preds = []
    for d in range(DOMAIN_NUM):
        mix = jnp.zeros((B, FEAT), jnp.float32)
        for i in range(NUM_EXPERT):
            mix = mix + own[d, i] * gates[d][:, i:i + 1]
        for i in range(NUM_EXPERT):
            mix = mix + share[i] * gates[d][:, NUM_EXPERT + i:NUM_EXPERT + i + 1]
        hh = jax.nn.relu(mix @ params["cW1"][d] + params["cb1"][d])
        lg = hh @ params["cW2"][d] + params["cb2"][d]
        preds.append(jax.nn.sigmoid(lg)[:, 0])
    preds = jnp.stack(preds)
    label_pred = preds.mean(axis=0)
    own_pred = preds[category, jnp.arange(B)]
    return own_pred[jnp.argsort(category)], label_pred


# ==================================== main ====================================
if __name__ == "__main__":
    key = jax.random.PRNGKey(0)
    keys = iter(jax.random.split(key, 64))

    def nrm(shape, scale=0.05):
        return (scale * jax.random.normal(next(keys), shape)).astype(jnp.float32)

    params = {
        "token_emb": nrm((VOCAB, E), 1.0),
        "w_att": nrm((E, 1), 0.2),
        "b_att": jnp.zeros((1, 1), jnp.float32),
        "domain_emb": nrm((DOMAIN_NUM, E), 1.0),
        "gW1": nrm((DOMAIN_NUM, 2 * E, H)),
        "gb1": nrm((DOMAIN_NUM, H), 0.02),
        "gW2": nrm((DOMAIN_NUM, H, GATE_NUM)),
        "gb2": nrm((DOMAIN_NUM, GATE_NUM), 0.02),
        # conv weights stored as (expert, tap, E, Cout); expert index = group*5+i,
        # groups 0..7 are expert1..expert8, group 8 is expertShare.
        "conv_w": tuple(nrm((N_EXPERTS, k, E, C_PER_K)) for k in KS),
        "conv_b": tuple(nrm((N_EXPERTS, 1, C_PER_K), 0.02) for _ in KS),
        "cW1": nrm((DOMAIN_NUM, FEAT, H)),
        "cb1": nrm((DOMAIN_NUM, 1, H), 0.02),
        "cW2": nrm((DOMAIN_NUM, H, 1), 0.1),
        "cb2": nrm((DOMAIN_NUM, 1, 1), 0.02),
    }

    content = jax.random.randint(jax.random.PRNGKey(1), (B, L), 0, VOCAB)
    lengths = jnp.array([L, 12, 9, 14], dtype=jnp.int32)
    content_masks = (jnp.arange(L)[None, :] < lengths[:, None]).astype(jnp.float32)
    category = jnp.array([0, 3, 3, 7], dtype=jnp.int32)

    label_pred_list, label_pred = forward(params, content, content_masks, category)
    jax.block_until_ready((label_pred_list, label_pred))

    ref_list, ref_pred = ref_forward(params, content, content_masks, category)
    np.testing.assert_allclose(np.asarray(label_pred_list), np.asarray(ref_list),
                               rtol=2e-2, atol=2e-2)
    np.testing.assert_allclose(np.asarray(label_pred), np.asarray(ref_pred),
                               rtol=2e-2, atol=2e-2)
    print("KERNEL_OK")
</pallas_src>

<mosaic_0001>
module attributes {stable_mosaic.version = 11 : i64} {
  func.func @mask_attention_kernel(%arg0: memref<4x16x32xf32, #tpu.memory_space<vmem>>, %arg1: memref<4x16xf32, #tpu.memory_space<vmem>>, %arg2: memref<1x32xf32, #tpu.memory_space<vmem>>, %arg3: memref<1x1xf32, #tpu.memory_space<vmem>>, %arg4: memref<4x32xf32, #tpu.memory_space<vmem>>) attributes {dimension_semantics = [], scalar_prefetch = 0 : i64, scratch_operands = 0 : i64, tpu.core_type = #tpu.core_type<tc>} {
    %c0 = arith.constant 0 : index
    %c0_0 = arith.constant 0 : index
    %c0_1 = arith.constant 0 : index
    %0 = vector.load %arg0[%c0, %c0_0, %c0_1] : memref<4x16x32xf32, #tpu.memory_space<vmem>>, vector<4x16x32xf32>
    %c0_2 = arith.constant 0 : index
    %c0_3 = arith.constant 0 : index
    %1 = vector.load %arg2[%c0_2, %c0_3] : memref<1x32xf32, #tpu.memory_space<vmem>>, vector<1x32xf32>
    %2 = vector.shape_cast %1 : vector<1x32xf32> to vector<1x1x32xf32>
    %3 = vector.broadcast %2 : vector<1x1x32xf32> to vector<4x16x32xf32>
    %4 = arith.mulf %0, %3 : vector<4x16x32xf32>
    %cst = arith.constant dense<0.000000e+00> : vector<4x16xf32>
    %5 = vector.multi_reduction <add>, %4, %cst [2] : vector<4x16x32xf32> to vector<4x16xf32>
    %c0_4 = arith.constant 0 : index
    %c0_5 = arith.constant 0 : index
    %6 = vector.load %arg3[%c0_4, %c0_5] : memref<1x1xf32, #tpu.memory_space<vmem>>, vector<1x1xf32>
    %7 = vector.broadcast %6 : vector<1x1xf32> to vector<4x16xf32>
    %8 = arith.addf %5, %7 : vector<4x16xf32>
    %c0_6 = arith.constant 0 : index
    %c0_7 = arith.constant 0 : index
    %9 = vector.load %arg1[%c0_6, %c0_7] : memref<4x16xf32, #tpu.memory_space<vmem>>, vector<4x16xf32>
    %cst_8 = arith.constant 0.000000e+00 : f32
    %10 = vector.broadcast %cst_8 : f32 to vector<4x16xf32>
    %11 = arith.cmpf ogt, %9, %10 : vector<4x16xf32>
    %cst_9 = arith.constant -1.000000e+30 : f32
    %12 = vector.broadcast %cst_9 : f32 to vector<4x16xf32>
    %13 = arith.select %11, %8, %12 : vector<4x16xi1>, vector<4x16xf32>
    %cst_10 = arith.constant dense<0xFF800000> : vector<4xf32>
    %14 = vector.multi_reduction <maximumf>, %13, %cst_10 [1] : vector<4x16xf32> to vector<4xf32>
    %15 = vector.shape_cast %14 : vector<4xf32> to vector<4x1xf32>
    %16 = vector.broadcast %15 : vector<4x1xf32> to vector<4x16xf32>
    %17 = arith.subf %13, %16 : vector<4x16xf32>
    %18 = math.exp %17 : vector<4x16xf32>
    %cst_11 = arith.constant dense<0.000000e+00> : vector<4xf32>
    %19 = vector.multi_reduction <add>, %18, %cst_11 [1] : vector<4x16xf32> to vector<4xf32>
    %20 = vector.shape_cast %19 : vector<4xf32> to vector<4x1xf32>
    %21 = tpu.reciprocal %20 {approx = true} : vector<4x1xf32> -> vector<4x1xf32>
    %22 = vector.broadcast %21 : vector<4x1xf32> to vector<4x16xf32>
    %23 = arith.mulf %18, %22 : vector<4x16xf32>
    %24 = vector.shape_cast %23 : vector<4x16xf32> to vector<4x16x1xf32>
    %25 = vector.broadcast %24 : vector<4x16x1xf32> to vector<4x16x32xf32>
    %26 = arith.mulf %25, %0 : vector<4x16x32xf32>
    %cst_12 = arith.constant dense<0.000000e+00> : vector<4x32xf32>
    %27 = vector.multi_reduction <add>, %26, %cst_12 [1] : vector<4x16x32xf32> to vector<4x32xf32>
    %c0_13 = arith.constant 0 : index
    %c0_14 = arith.constant 0 : index
    %28 = vector.load %arg4[%c0_13, %c0_14] : memref<4x32xf32, #tpu.memory_space<vmem>>, vector<4x32xf32>
    tpu.vector_store %arg4[%c0_13, %c0_14], %27 {strides = array<i32>} : memref<4x32xf32, #tpu.memory_space<vmem>>, vector<4x32xf32>,
    return
  }
}

</mosaic_0001>

<bundles_post_ra>
// kernel: tpu_custom_call.1
= control target key start
LH: loop header
LB: loop body
LE: loop exit
PB: predicated region body
PF: predicated region fallthrough
CT: control target
= control target key end

     0   :  { %s472_s0 = inlined_call_operand.hbm [shape: f32[4,16,32], index: 0, kind: input, shape index: {}]   ;;  %s473_s1 = inlined_call_operand.vmem [shape: f32[4,16], index: 1, kind: input, shape index: {}]   ;;  %s474_s2 = inlined_call_operand.vmem [shape: f32[1,32], index: 2, kind: input, shape index: {}]   ;;  %s475_s3 = inlined_call_operand.<no memory space> [shape: f32[1,1], index: 3, kind: input, shape index: {}]   ;;  %s476_s4 = inlined_call_operand.hbm [shape: f32[4,32], index: 4, kind: output, shape index: {}]  }
   0x1   :  { %v9_v0 = vstv %s475_s3 }
   0x2   :  { %10 = vst [vmem:[#allocation2] sm:$0x1] %v9_v0 }
   0x3   :  { %11 = vsyncpa [#allocation4], 0 }
   0x4   :  { %12 = vsyncpa [#allocation5], 0  ;;  %s343_s17 = smov [#allocation3]   ;;  %s295_s21 = scalar_lea.hbm %s472_s0, 1024 }
   0x5   :  { %s18_s18 = sshll.u32 %s343_s17, 4  ;;  %p296_p0 = scmp.ne.s32.totalorder %s472_s0, %s295_s21  ;;  %s19_s18 = int_to_ptr.vmem [resolvable:$true] %s18_s18 }
   0x6   :  { %p299_p1 = scmp.lt.u32.totalorder %s295_s21, %s472_s0 }
   0x8   :  { %p301_p2 = pnand %p299_p1, %p296_p0 }
   0xa   :  { %304 = shalt.err (!%p301_p2)
}
   0xb   :  { %s305_s3 = scalar_lea.vmem %s19_s18, 1024  ;;  %p310_p4 = scmp.lt.s32.totalorder %s19_s18, %s19_s18 }
   0xc   :  { %p306_p3 = scmp.ne.s32.totalorder %s19_s18, %s305_s3  ;;  %p311_p5 = scmp.lt.s32.totalorder %s305_s3, %s305_s3 }
   0xe   :  { %p312_p6 = por %p311_p5, %p310_p4 }
  0x10   :  { %p313_p7 = pnand %p312_p6, %p306_p3 }
  0x12   :  { %316 = shalt.err (!%p313_p7)
}
  0x13   :  { %s344_s26 = smov 128   ;;  %s345_s27 = smov 8  }
  0x14   :  { %24 = dma.hbm_to_vmem [thread:$0]  %s472_s0, 1024, %s19_s18, [#allocation4], %s344_s26, %s344_s26, %s345_s27  }
  0x15   :  { %339 = dma.done.wait [#allocation4], 1024  }
  0x16   :  { %340 = vsyncadd [#allocation4], 4294966272  ;;  %v346_v1 = vmov 0   ;;  %v388_v2 = vld [vmem:[#allocation3] sm:$0xff]  ;;  %v283_v3 = vld [vmem:[%s474_s2] ss:$0 sm:$0xff]  ;;  %v110_v32 = vlaneseq }
  0x17   :  { %290 = vset.pattern.permute.xlu0 %v346_v1  ;;  %vm57_vm0 = vcmask 261120   ;;  %v393_v4 = vld [vmem:[#allocation3 + $0x8] sm:$0xff]  ;;  %v49_v5 = vmul.f32 %v283_v3, %v388_v2  ;;  %v397_v7 = vld [vmem:[#allocation3 + $0x10] sm:$0xff]  ;;  %v399_v8 = vld [vmem:[#allocation3 + $0x18] sm:$0xff]  ;;  %vm121_vm1 = vcmask 130112   ;;  %vm150_vm2 = vcmask 1041409  }
  0x18   :  { %v50_v6 = vmul.f32 %v283_v3, %v393_v4  ;;  %v51_v9 = vmul.f32 %v283_v3, %v397_v7  ;;  %v402_v10 = vld [vmem:[#allocation3 + $0x20] sm:$0xff]  ;;  %v52_v11 = vmul.f32 %v283_v3, %v399_v8  ;;  %v406_v13 = vld [vmem:[#allocation3 + $0x28] sm:$0xff]  ;;  %v412_v18 = vld [vmem:[#allocation3 + $0x30] sm:$0xff]  ;;  %v111_v34 = vand.u32 127, %v110_v32 }
  0x19   :  { %v58_v12 = vsel %vm57_vm0, %v49_v5, 0.0  ;;  %v53_v16 = vmul.f32 %v283_v3, %v402_v10  ;;  %v54_v19 = vmul.f32 %v283_v3, %v406_v13  ;;  %v415_v20 = vld [vmem:[#allocation3 + $0x38] sm:$0xff]  ;;  %v55_v22 = vmul.f32 %v283_v3, %v412_v18 }
  0x1a   :  { %59 = vadd.xlane.f32.xlu0 %v58_v12  ;;  %v64_v14 = vsel %vm57_vm0, %v51_v9, 0.0  ;;  %v61_v15 = vsel %vm57_vm0, %v50_v6, 0.0  ;;  %v67_v17 = vsel %vm57_vm0, %v52_v11, 0.0  ;;  %v56_v24 = vmul.f32 %v283_v3, %v415_v20  ;;  %v284_v27 = vld [vmem:[#allocation2] ss:$0 sm:$0xff] }
  0x1b   :  { %65 = vadd.xlane.f32.xlu1 %v64_v14  ;;  %v70_v21 = vsel %vm57_vm0, %v53_v16, 0.0  ;;  %v73_v23 = vsel %vm57_vm0, %v54_v19, 0.0  ;;  %v76_v25 = vsel %vm57_vm0, %v55_v22, 0.0  ;;  %v423_v36 = vshrl.u32 %v110_v32, 7  ;;  %v100_v51 = vld [vmem:[%s473_s1] sm:$0xf] }
  0x1c   :  { %v79_v26 = vsel %vm57_vm0, %v56_v24, 0.0  ;;  %v116_v37 = vadd.s32 4294967288, %v111_v34  ;;  %vm152_vm3 = vcmask 1042434   ;;  %vm154_vm4 = vcmask 1043459   ;;  %s347_s1 = smov [#allocation6]  }
  0x1d   :  { %v114_v40 = vsub.s32 %v111_v34, %v423_v36  ;;  %vm101_vm5 = vcmp.gt.f32.partialorder %v100_v51, 0.0  ;;  %vm158_vm6 = vcmask 125952   ;;  %v172_v19 = vsub.s32 0, %v423_v36  ;;  %s274_s6 = sshll.u32 %s347_s1, 4  ;;  %s275_s6 = int_to_ptr.vmem [resolvable:$true] %s274_s6 }
  0x1e   :  { %62 = vadd.xlane.f32.xlu0 %v61_v15  ;;  %v119_v41 = vsub.s32 %v116_v37, %v423_v36  ;;  %vm266_vm7 = vcmask 257024   ;;  %s317_s7 = scalar_lea.vmem %s275_s6, 64  ;;  %p322_p9 = scmp.lt.s32.totalorder %s275_s6, %s275_s6 }
  0x1f   :  { %68 = vadd.xlane.f32.xlu1 %v67_v17  ;;  %v205_v17 = vsub.s32 3, %v423_v36  ;;  %p318_p8 = scmp.ne.s32.totalorder %s275_s6, %s317_s7  ;;  %p323_p10 = scmp.lt.s32.totalorder %s317_s7, %s317_s7 }
  0x21   :  { %p324_p11 = por %p323_p10, %p322_p9 }
  0x22   :  { %71 = vadd.xlane.f32.xlu0 %v70_v21 }
  0x23   :  { %74 = vadd.xlane.f32.xlu1 %v73_v23  ;;  %p325_p12 = pnand %p324_p11, %p318_p8 }
  0x26   :  { %77 = vadd.xlane.f32.xlu0 %v76_v25  ;;  %v183_v25 = vsub.s32 1, %v423_v36 }
  0x27   :  { %80 = vadd.xlane.f32.xlu1 %v79_v26 }
  0x3c   :  { %89 = vperm.xlu0 %290, %v284_v27   ;;  %v194_v27 = vsub.s32 2, %v423_v36 }
  0xa7   :  { %v60_v28 = vpop.xlane.xlu0 %59 }
  0xa8   :  { %v66_v29 = vpop.xlane.xlu1 %65 }
  0xab   :  { %v63_v30 = vpop.xlane.xlu0 %62 }
  0xac   :  { %v69_v31 = vpop.xlane.xlu1 %68 }
  0xaf   :  { %v72_v33 = vpop.xlane.xlu0 %71 }
  0xb0   :  { %v75_v35 = vpop.xlane.xlu1 %74 }
  0xb3   :  { %v78_v38 = vpop.xlane.xlu0 %77 }
  0xb4   :  { %v81_v39 = vpop.xlane.xlu1 %80 }
  0xbb   :  { %v90_v42 = vpop.permute.xlu0 %89 }
  0xbc   :  { %v92_v43 = vadd.f32 %v90_v42, %v60_v28  ;;  %v93_v44 = vadd.f32 %v90_v42, %v63_v30  ;;  %v94_v45 = vadd.f32 %v90_v42, %v66_v29  ;;  %v95_v46 = vadd.f32 %v90_v42, %v69_v31 }
  0xbd   :  { %v96_v47 = vadd.f32 %v90_v42, %v72_v33  ;;  %v97_v48 = vadd.f32 %v90_v42, %v75_v35  ;;  %v98_v49 = vadd.f32 %v90_v42, %v78_v38  ;;  %v99_v50 = vadd.f32 %v90_v42, %v81_v39 }
  0xbe   :  { %v115_v52 = vrot.slane %v92_v43, %v114_v40  ;;  %v120_v53 = vrot.slane %v93_v44, %v119_v41  ;;  %v126_v54 = vrot.slane %v94_v45, %v114_v40  ;;  %v130_v55 = vrot.slane %v95_v46, %v119_v41 }
  0xbf   :  { %v135_v56 = vrot.slane %v96_v47, %v114_v40  ;;  %v139_v57 = vrot.slane %v97_v48, %v119_v41  ;;  %v144_v58 = vrot.slane %v98_v49, %v114_v40  ;;  %v148_v59 = vrot.slane %v99_v50, %v119_v41 }
  0xc0   :  { %v122_v60 = vsel %vm121_vm1, %v120_v53, %v115_v52  ;;  %v131_v61 = vsel %vm121_vm1, %v130_v55, %v126_v54 }
  0xc1   :  { %v140_v62 = vsel %vm121_vm1, %v139_v57, %v135_v56  ;;  %v151_v63 = vsel %vm150_vm2, %v131_v61, %v122_v60  ;;  %v149_v0 = vsel %vm121_vm1, %v148_v59, %v144_v58 }
  0xc2   :  { %v153_v1 = vsel %vm152_vm3, %v140_v62, %v151_v63 }
  0xc3   :  { %v155_v3 = vsel %vm154_vm4, %v149_v0, %v153_v1 }
  0xc4   :  { %v157_v5 = vsel %vm101_vm5, %v155_v3, -1e+30 }
  0xc5   :  { %v159_v6 = vsel %vm158_vm6, %v157_v5, -inf }
  0xc6   :  { %160 = vmax.xlane.f32.xlu1 %v159_v6 }
 0x153   :  { %v161_v9 = vpop.xlane.xlu1 %160 }
 0x154   :  { %v162_v11 = vsub.f32 %v157_v5, %v161_v9 }
 0x156   :  { %v163_v12 = vmul.f32 1.442695, %v162_v11 }
 0x158   :  { %291 = vpow2.f32 %v163_v12 }
 0x162   :  { %v292_v14 = vpop.eup %291 }
 0x163   :  { %v165_v15 = vsel %vm158_vm6, %v292_v14, 0.0 }
 0x164   :  { %166 = vadd.xlane.f32.xlu1 %v165_v15 }
 0x1f1   :  { %v167_v16 = vpop.xlane.xlu1 %166 }
 0x1f2   :  { %293 = vrcp.f32 %v167_v16 }
 0x1fc   :  { %v294_v21 = vpop.eup %293 }
 0x1fd   :  { %v169_v22 = vmul.f32 %v294_v21, %v292_v14 }
 0x1ff   :  { %v206_v23 = vrot.slane %v169_v22, %v205_v17  ;;  %v173_v24 = vrot.slane %v169_v22, %v172_v19  ;;  %v184_v26 = vrot.slane %v169_v22, %v183_v25  ;;  %v195_v28 = vrot.slane %v169_v22, %v194_v27 }
 0x201   :  { %208 = vbcast.lane.b32.xlu0 %v206_v23, 256  ;;  %175 = vbcast.lane.b32.xlu1 %v173_v24, 256 }
 0x205   :  { %179 = vbcast.lane.b32.xlu1 %v173_v24, 264 }
 0x209   :  { %186 = vbcast.lane.b32.xlu1 %v184_v26, 256 }
 0x20d   :  { %190 = vbcast.lane.b32.xlu1 %v184_v26, 264 }
 0x211   :  { %197 = vbcast.lane.b32.xlu1 %v195_v28, 256 }
 0x215   :  { %201 = vbcast.lane.b32.xlu1 %v195_v28, 264 }
 0x219   :  { %212 = vbcast.lane.b32.xlu1 %v206_v23, 264 }
 0x273   :  { %v176_v29 = vpop.permute.xlu1 %175  ;;  %v209_v45 = vpop.permute.xlu0 %208 }
 0x274   :  { %v214_v33 = vmul.f32 %v176_v29, %v388_v2  ;;  %v220_v49 = vmul.f32 %v209_v45, %v412_v18 }
 0x276   :  { %v222_v38 = vsel %vm57_vm0, %v214_v33, 0.0 }
 0x277   :  { %v180_v30 = vpop.permute.xlu1 %179 }
 0x278   :  { %v215_v31 = vmul.f32 %v180_v30, %v393_v4 }
 0x27a   :  { %v223_v34 = vsel %vm57_vm0, %v215_v31, 0.0 }
 0x27b   :  { %v187_v32 = vpop.permute.xlu1 %186  ;;  %v224_v39 = vadd.f32 %v223_v34, %v222_v38 }
 0x27c   :  { %v216_v35 = vmul.f32 %v187_v32, %v397_v7 }
 0x27d   :  { %v225_v4 = vrot.slane %v224_v39, 4 }
 0x27e   :  { %v231_v40 = vsel %vm57_vm0, %v216_v35, 0.0 }
 0x27f   :  { %v191_v37 = vpop.permute.xlu1 %190  ;;  %v226_v48 = vadd.f32 %v225_v4, %v224_v39 }
 0x280   :  { %v217_v36 = vmul.f32 %v191_v37, %v399_v8 }
 0x281   :  { %v227_v55 = vrot.slane %v226_v48, 2 }
 0x282   :  { %v232_v41 = vsel %vm57_vm0, %v217_v36, 0.0 }
 0x283   :  { %v233_v42 = vadd.f32 %v232_v41, %v231_v40  ;;  %v198_v43 = vpop.permute.xlu1 %197  ;;  %v228_v60 = vadd.f32 %v227_v55, %v226_v48 }
 0x284   :  { %v218_v2 = vmul.f32 %v198_v43, %v402_v10  ;;  %v249_v10 = vsel %vm57_vm0, %v220_v49, 0.0 }
 0x285   :  { %v234_v44 = vrot.slane %v233_v42, 4  ;;  %v229_v1 = vrot.slane %v228_v60, 1 }
 0x286   :  { %v240_v8 = vsel %vm57_vm0, %v218_v2, 0.0 }
 0x287   :  { %v235_v46 = vadd.f32 %v234_v44, %v233_v42  ;;  %v202_v47 = vpop.permute.xlu1 %201  ;;  %v230_v11 = vadd.f32 %v229_v1, %v228_v60 }
 0x288   :  { %v219_v7 = vmul.f32 %v202_v47, %v406_v13 }
 0x289   :  { %v236_v51 = vrot.slane %v235_v46, 2 }
 0x28a   :  { %v241_v50 = vsel %vm57_vm0, %v219_v7, 0.0 }
 0x28b   :  { %v242_v52 = vadd.f32 %v241_v50, %v240_v8  ;;  %v213_v53 = vpop.permute.xlu1 %212  ;;  %v237_v58 = vadd.f32 %v236_v51, %v235_v46 }
 0x28c   :  { %v221_v54 = vmul.f32 %v213_v53, %v415_v20 }
 0x28d   :  { %v243_v56 = vrot.slane %v242_v52, 4  ;;  %v238_v62 = vrot.slane %v237_v58, 1 }
 0x28e   :  { %v250_v57 = vsel %vm57_vm0, %v221_v54, 0.0 }
 0x28f   :  { %v244_v13 = vadd.f32 %v243_v56, %v242_v52  ;;  %v251_v59 = vadd.f32 %v250_v57, %v249_v10  ;;  %v239_v6 = vadd.f32 %v238_v62, %v237_v58 }
 0x291   :  { %v245_v18 = vrot.slane %v244_v13, 2  ;;  %v252_v61 = vrot.slane %v251_v59, 4  ;;  %v262_v15 = vsel %vm150_vm2, %v239_v6, %v230_v11 }
 0x293   :  { %v246_v63 = vadd.f32 %v245_v18, %v244_v13  ;;  %v253_v0 = vadd.f32 %v252_v61, %v251_v59 }
 0x295   :  { %v247_v3 = vrot.slane %v246_v63, 1  ;;  %v254_v5 = vrot.slane %v253_v0, 2 }
 0x297   :  { %v255_v20 = vadd.f32 %v254_v5, %v253_v0  ;;  %v248_v9 = vadd.f32 %v247_v3, %v246_v63 }
 0x299   :  { %v256_v12 = vrot.slane %v255_v20, 1  ;;  %v263_v16 = vsel %vm152_vm3, %v248_v9, %v262_v15 }
 0x29b   :  { %v257_v14 = vadd.f32 %v256_v12, %v255_v20 }
 0x29d   :  { %v264_v17 = vsel %vm154_vm4, %v257_v14, %v263_v16 }
 0x29e   :  { %267 = vst.msk [vmem:[#allocation6] sm:$0xf] %vm266_vm7, %v264_v17 }
 0x29f   :  { %328 = shalt.err (!%p325_p12)
}
 0x2a0   :  { %s329_s10 = scalar_lea.hbm %s476_s4, 64 }
 0x2a1   :  { %p330_p13 = scmp.ne.s32.totalorder %s476_s4, %s329_s10  ;;  %p333_p0 = scmp.lt.u32.totalorder %s329_s10, %s476_s4 }
 0x2a3   :  { %p335_p1 = pnand %p333_p0, %p330_p13 }
 0x2a5   :  { %338 = shalt.err (!%p335_p1)
}
 0x2a6   :  { %277 = dma.vmem_to_hbm [thread:$0]  %s275_s6, 64, %s476_s4, [#allocation5]  }
 0x2a7   :  { %341 = dma.done.wait [#allocation5], 64  }
 0x2a8   :  { %342 = vsyncadd [#allocation5], 4294967232 }
 0x2a9   :  { %281 = vsyncpa [#allocation4], 1 }
 0x2aa   :  { %282 = vsyncpa [#allocation5], 1 }

</bundles_post_ra>
